<compile_context>
chip_gen: v5e
topology: v5e:2x2
jax: 0.10.0
libtpu: 0.0.40
codegen_flags: <defaults>
</compile_context>

<pallas_src>
import math
import functools

import jax
import jax.numpy as jnp
from jax import lax
from jax.experimental import pallas as pl
from jax.experimental.pallas import tpu as pltpu


def emb_pos_kernel(ids_ref, emb_hbm, pos_ref, *rest, seq_tile, apply_mask):
    """One grid step = one (batch row, seq tile).

    ids_ref : SMEM (batch, seq) int32          (scalar-prefetched token ids)
    emb_hbm : HBM  (vocab, emb) f32            (memory_space=pl.ANY, never auto-copied)
    pos_ref : VMEM (seq_tile, emb) f32         (positional-encoding tile)
    mask_ref: VMEM (1, seq_tile, emb) f32      (only when apply_mask: 0 or 1/(1-p))
    out_ref : VMEM (1, seq_tile, emb) f32
    stage   : VMEM (seq_tile, emb) f32         (gather staging buffer)
    sem     : DMA semaphores (seq_tile,)
    """
    if apply_mask:
        mask_ref, out_ref, stage, sem = rest
    else:
        out_ref, stage, sem = rest

    b = pl.program_id(0)
    j = pl.program_id(1)
    s0 = j * seq_tile

    # ---- 1) issue one row-gather DMA per token of this tile (table stays in HBM)
    def issue(t, carry):
        tok = ids_ref[b, s0 + t]
        pltpu.make_async_copy(
            emb_hbm.at[pl.ds(tok, 1), :],      # (1, emb) row in HBM
            stage.at[pl.ds(t, 1), :],          # (1, emb) row in VMEM stage
            sem.at[t],
        ).start()
        return carry

    # ---- 2) wait for all row DMAs of this tile
    def drain(t, carry):
        pltpu.make_async_copy(
            emb_hbm.at[pl.ds(0, 1), :],        # placeholder src; wait needs dst/sem only
            stage.at[pl.ds(t, 1), :],
            sem.at[t],
        ).wait()
        return carry

    if seq_tile <= 32:
        # Small tiles (the toy config): fully static issue/wait, no loop overhead.
        for t in range(seq_tile):
            issue(t, 0)
        for t in range(seq_tile):
            drain(t, 0)
    else:
        # Large tiles: bounded loops (no full unroll -> no vreg/code blowup).
        lax.fori_loop(0, seq_tile, issue, 0)
        lax.fori_loop(0, seq_tile, drain, 0)

    # ---- 3) one vectorized compute + single store for the whole (seq_tile, emb) tile,
    #         with dropout fused into the same store.
    res = stage[...] + pos_ref[...]
    if apply_mask:
        res = res * mask_ref[0]
    out_ref[0] = res.astype(out_ref.dtype)


def _pick_seq_tile(seq):
    for ts in (256, 128, 64, 32, 16, 8):
        if seq % ts == 0:
            return ts
    return seq


def embedding_with_position(token_ids, emb_table, pos_encoding, *,
                            dropout_p=0.3, training=False, rng=None):
    batch, seq = token_ids.shape
    vocab, emb = emb_table.shape
    pos_slice = pos_encoding[:seq, :].astype(jnp.float32)   # == pos_encoding[:, :x.size(1), :]

    seq_tile = _pick_seq_tile(seq)
    assert seq % seq_tile == 0
    n_tiles = seq // seq_tile

    apply_mask = bool(training and dropout_p > 0.0)

    inputs = [token_ids.astype(jnp.int32),            # scalar-prefetch -> SMEM
              emb_table.astype(jnp.float32),           # stays in HBM
              pos_slice]
    in_specs = [
        pl.BlockSpec(memory_space=pl.ANY),                           # table: no auto-DMA
        pl.BlockSpec((seq_tile, emb), lambda b, j, ids: (j, 0)),     # pos tile
    ]
    if apply_mask:
        if rng is None:
            rng = jax.random.PRNGKey(0)
        keep = jax.random.bernoulli(rng, 1.0 - dropout_p, (batch, seq, emb))
        mask = keep.astype(jnp.float32) * jnp.float32(1.0 / (1.0 - dropout_p))
        inputs.append(mask)
        in_specs.append(pl.BlockSpec((1, seq_tile, emb), lambda b, j, ids: (b, j, 0)))

    kernel = functools.partial(emb_pos_kernel, seq_tile=seq_tile, apply_mask=apply_mask)

    return pl.pallas_call(
        kernel,
        out_shape=jax.ShapeDtypeStruct((batch, seq, emb), jnp.float32),
        grid_spec=pltpu.PrefetchScalarGridSpec(
            num_scalar_prefetch=1,                      # token ids land in SMEM
            grid=(batch, n_tiles),
            in_specs=in_specs,
            out_specs=pl.BlockSpec((1, seq_tile, emb), lambda b, j, ids: (b, j, 0)),
            scratch_shapes=[
                pltpu.VMEM((seq_tile, emb), jnp.float32),   # gather staging buffer
                pltpu.SemaphoreType.DMA((seq_tile,)),       # one sem per gathered row
            ],
        ),
        compiler_params=pltpu.CompilerParams(
            dimension_semantics=("parallel", "parallel"),   # batch & seq tiles independent
            vmem_limit_bytes=32 * 1024 * 1024,              # explicit budget (safe on v7x 64 MiB)
        ),
    )(*inputs)


def make_pos_encoding(seq_max_len, emb_size):
    """Same math as the PyTorch __init__ buffer construction."""
    position_idx = jnp.arange(seq_max_len, dtype=jnp.float32)[:, None]
    div = jnp.exp(-jnp.arange(0, emb_size, 2, dtype=jnp.float32)
                  * (math.log(10000.0) / emb_size))
    fill = position_idx * div                                    # (seq_max_len, emb/2)
    pe = jnp.zeros((seq_max_len, emb_size), jnp.float32)
    pe = pe.at[:, 0::2].set(jnp.sin(fill))
    pe = pe.at[:, 1::2].set(jnp.cos(fill))
    return pe


if __name__ == "__main__":
    vocab_size = 64
    emb_size = 32
    seq_len = 8
    batch = 2
    seq_max_len = 64

    key = jax.random.PRNGKey(0)
    k_emb, k_ids, k_drop = jax.random.split(key, 3)

    # nn.Embedding default init: N(0, 1)
    emb_table = jax.random.normal(k_emb, (vocab_size, emb_size), dtype=jnp.float32)
    pos_encoding = make_pos_encoding(seq_max_len, emb_size)
    token_ids = jax.random.randint(k_ids, (batch, seq_len), 0, vocab_size, dtype=jnp.int32)

    # Eval-mode forward (dropout = identity): deterministic and checkable.
    out = embedding_with_position(token_ids, emb_table, pos_encoding,
                                  dropout_p=0.3, training=False)
    out = jax.block_until_ready(out)

    ref = emb_table[token_ids] + pos_encoding[None, :seq_len, :]
    assert out.shape == (batch, seq_len, emb_size)
    assert jnp.allclose(out, ref, atol=1e-5, rtol=1e-5), "mismatch vs reference"

    # Train-mode path: dropout mask fused into the single store inside the kernel.
    out_train = jax.block_until_ready(
        embedding_with_position(token_ids, emb_table, pos_encoding,
                                dropout_p=0.3, training=True, rng=k_drop))
    assert out_train.shape == (batch, seq_len, emb_size)
    scale = 1.0 / (1.0 - 0.3)
    ok = jnp.isclose(out_train, ref * scale, atol=1e-5, rtol=1e-5) | (out_train == 0.0)
    assert bool(jnp.all(ok)), "train-mode output is not {0, scaled-ref}"

    print("KERNEL_OK")
</pallas_src>

<mosaic_0001>
module attributes {stable_mosaic.version = 11 : i64} {
  func.func @emb_pos_kernel(%arg0: i32, %arg1: i32, %arg2: memref<2x8xi32, #tpu.memory_space<smem>>, %arg3: memref<64x32xf32, #tpu.memory_space<any>>, %arg4: memref<8x32xf32, #tpu.memory_space<vmem>>, %arg5: memref<1x8x32xf32, #tpu.memory_space<vmem>>, %arg6: memref<8x32xf32, #tpu.memory_space<vmem>>, %arg7: memref<8x!tpu.dma_semaphore, #tpu.memory_space<semaphore_mem>>) attributes {dimension_semantics = [#tpu.dimension_semantics<parallel>, #tpu.dimension_semantics<parallel>], iteration_bounds = array<i64: 2, 1>, scalar_prefetch = 1 : i64, scratch_operands = 2 : i64, tpu.core_type = #tpu.core_type<tc>, window_params = [{}, {transform_indices = @transform_1, window_bounds = array<i64: 8, 32>}, {transform_indices = @transform_2, window_bounds = array<i64: 1, 8, 32>}]} {
    %c8_i32 = arith.constant 8 : i32
    %0 = arith.muli %arg1, %c8_i32 : i32
    %c0_i32 = arith.constant 0 : i32
    %1 = arith.addi %0, %c0_i32 : i32
    %2 = arith.index_cast %arg0 : i32 to index
    %3 = arith.index_cast %1 : i32 to index
    %4 = memref.load %arg2[%2, %3] : memref<2x8xi32, #tpu.memory_space<smem>>
    %c0_i32_0 = arith.constant 0 : i32
    %c0_i32_1 = arith.constant 0 : i32
    %5 = tpu.memref_slice %arg3[%4, %c0_i32_1] : memref<64x32xf32, #tpu.memory_space<any>> -> memref<1x32xf32, #tpu.memory_space<any>>
    %c0_i32_2 = arith.constant 0 : i32
    %c0_i32_3 = arith.constant 0 : i32
    %6 = tpu.memref_slice %arg6[%c0_i32_2, %c0_i32_3] : memref<8x32xf32, #tpu.memory_space<vmem>> -> memref<1x32xf32, #tpu.memory_space<vmem>>
    %7 = tpu.memref_slice %arg7[%c0_i32_0] : memref<8x!tpu.dma_semaphore, #tpu.memory_space<semaphore_mem>> -> memref<1x!tpu.dma_semaphore, #tpu.memory_space<semaphore_mem>>
    %8 = tpu.memref_squeeze %7 : memref<1x!tpu.dma_semaphore, #tpu.memory_space<semaphore_mem>> -> memref<!tpu.dma_semaphore, #tpu.memory_space<semaphore_mem>>
    tpu.enqueue_dma source(%5 : memref<1x32xf32, #tpu.memory_space<any>>) target(%6 : memref<1x32xf32, #tpu.memory_space<vmem>>) target_semaphore(%8 : memref<!tpu.dma_semaphore, #tpu.memory_space<semaphore_mem>>)
    %c1_i32 = arith.constant 1 : i32
    %9 = arith.addi %0, %c1_i32 : i32
    %10 = arith.index_cast %arg0 : i32 to index
    %11 = arith.index_cast %9 : i32 to index
    %12 = memref.load %arg2[%10, %11] : memref<2x8xi32, #tpu.memory_space<smem>>
    %c1_i32_4 = arith.constant 1 : i32
    %c0_i32_5 = arith.constant 0 : i32
    %13 = tpu.memref_slice %arg3[%12, %c0_i32_5] : memref<64x32xf32, #tpu.memory_space<any>> -> memref<1x32xf32, #tpu.memory_space<any>>
    %c1_i32_6 = arith.constant 1 : i32
    %c0_i32_7 = arith.constant 0 : i32
    %14 = tpu.memref_slice %arg6[%c1_i32_6, %c0_i32_7] : memref<8x32xf32, #tpu.memory_space<vmem>> -> memref<1x32xf32, #tpu.memory_space<vmem>>
    %15 = tpu.memref_slice %arg7[%c1_i32_4] : memref<8x!tpu.dma_semaphore, #tpu.memory_space<semaphore_mem>> -> memref<1x!tpu.dma_semaphore, #tpu.memory_space<semaphore_mem>>
    %16 = tpu.memref_squeeze %15 : memref<1x!tpu.dma_semaphore, #tpu.memory_space<semaphore_mem>> -> memref<!tpu.dma_semaphore, #tpu.memory_space<semaphore_mem>>
    tpu.enqueue_dma source(%13 : memref<1x32xf32, #tpu.memory_space<any>>) target(%14 : memref<1x32xf32, #tpu.memory_space<vmem>>) target_semaphore(%16 : memref<!tpu.dma_semaphore, #tpu.memory_space<semaphore_mem>>)
    %c2_i32 = arith.constant 2 : i32
    %17 = arith.addi %0, %c2_i32 : i32
    %18 = arith.index_cast %arg0 : i32 to index
    %19 = arith.index_cast %17 : i32 to index
    %20 = memref.load %arg2[%18, %19] : memref<2x8xi32, #tpu.memory_space<smem>>
    %c2_i32_8 = arith.constant 2 : i32
    %c0_i32_9 = arith.constant 0 : i32
    %21 = tpu.memref_slice %arg3[%20, %c0_i32_9] : memref<64x32xf32, #tpu.memory_space<any>> -> memref<1x32xf32, #tpu.memory_space<any>>
    %c2_i32_10 = arith.constant 2 : i32
    %c0_i32_11 = arith.constant 0 : i32
    %22 = tpu.memref_slice %arg6[%c2_i32_10, %c0_i32_11] : memref<8x32xf32, #tpu.memory_space<vmem>> -> memref<1x32xf32, #tpu.memory_space<vmem>>
    %23 = tpu.memref_slice %arg7[%c2_i32_8] : memref<8x!tpu.dma_semaphore, #tpu.memory_space<semaphore_mem>> -> memref<1x!tpu.dma_semaphore, #tpu.memory_space<semaphore_mem>>
    %24 = tpu.memref_squeeze %23 : memref<1x!tpu.dma_semaphore, #tpu.memory_space<semaphore_mem>> -> memref<!tpu.dma_semaphore, #tpu.memory_space<semaphore_mem>>
    tpu.enqueue_dma source(%21 : memref<1x32xf32, #tpu.memory_space<any>>) target(%22 : memref<1x32xf32, #tpu.memory_space<vmem>>) target_semaphore(%24 : memref<!tpu.dma_semaphore, #tpu.memory_space<semaphore_mem>>)
    %c3_i32 = arith.constant 3 : i32
    %25 = arith.addi %0, %c3_i32 : i32
    %26 = arith.index_cast %arg0 : i32 to index
    %27 = arith.index_cast %25 : i32 to index
    %28 = memref.load %arg2[%26, %27] : memref<2x8xi32, #tpu.memory_space<smem>>
    %c3_i32_12 = arith.constant 3 : i32
    %c0_i32_13 = arith.constant 0 : i32
    %29 = tpu.memref_slice %arg3[%28, %c0_i32_13] : memref<64x32xf32, #tpu.memory_space<any>> -> memref<1x32xf32, #tpu.memory_space<any>>
    %c3_i32_14 = arith.constant 3 : i32
    %c0_i32_15 = arith.constant 0 : i32
    %30 = tpu.memref_slice %arg6[%c3_i32_14, %c0_i32_15] : memref<8x32xf32, #tpu.memory_space<vmem>> -> memref<1x32xf32, #tpu.memory_space<vmem>>
    %31 = tpu.memref_slice %arg7[%c3_i32_12] : memref<8x!tpu.dma_semaphore, #tpu.memory_space<semaphore_mem>> -> memref<1x!tpu.dma_semaphore, #tpu.memory_space<semaphore_mem>>
    %32 = tpu.memref_squeeze %31 : memref<1x!tpu.dma_semaphore, #tpu.memory_space<semaphore_mem>> -> memref<!tpu.dma_semaphore, #tpu.memory_space<semaphore_mem>>
    tpu.enqueue_dma source(%29 : memref<1x32xf32, #tpu.memory_space<any>>) target(%30 : memref<1x32xf32, #tpu.memory_space<vmem>>) target_semaphore(%32 : memref<!tpu.dma_semaphore, #tpu.memory_space<semaphore_mem>>)
    %c4_i32 = arith.constant 4 : i32
    %33 = arith.addi %0, %c4_i32 : i32
    %34 = arith.index_cast %arg0 : i32 to index
    %35 = arith.index_cast %33 : i32 to index
    %36 = memref.load %arg2[%34, %35] : memref<2x8xi32, #tpu.memory_space<smem>>
    %c4_i32_16 = arith.constant 4 : i32
    %c0_i32_17 = arith.constant 0 : i32
    %37 = tpu.memref_slice %arg3[%36, %c0_i32_17] : memref<64x32xf32, #tpu.memory_space<any>> -> memref<1x32xf32, #tpu.memory_space<any>>
    %c4_i32_18 = arith.constant 4 : i32
    %c0_i32_19 = arith.constant 0 : i32
    %38 = tpu.memref_slice %arg6[%c4_i32_18, %c0_i32_19] : memref<8x32xf32, #tpu.memory_space<vmem>> -> memref<1x32xf32, #tpu.memory_space<vmem>>
    %39 = tpu.memref_slice %arg7[%c4_i32_16] : memref<8x!tpu.dma_semaphore, #tpu.memory_space<semaphore_mem>> -> memref<1x!tpu.dma_semaphore, #tpu.memory_space<semaphore_mem>>
    %40 = tpu.memref_squeeze %39 : memref<1x!tpu.dma_semaphore, #tpu.memory_space<semaphore_mem>> -> memref<!tpu.dma_semaphore, #tpu.memory_space<semaphore_mem>>
    tpu.enqueue_dma source(%37 : memref<1x32xf32, #tpu.memory_space<any>>) target(%38 : memref<1x32xf32, #tpu.memory_space<vmem>>) target_semaphore(%40 : memref<!tpu.dma_semaphore, #tpu.memory_space<semaphore_mem>>)
    %c5_i32 = arith.constant 5 : i32
    %41 = arith.addi %0, %c5_i32 : i32
    %42 = arith.index_cast %arg0 : i32 to index
    %43 = arith.index_cast %41 : i32 to index
    %44 = memref.load %arg2[%42, %43] : memref<2x8xi32, #tpu.memory_space<smem>>
    %c5_i32_20 = arith.constant 5 : i32
    %c0_i32_21 = arith.constant 0 : i32
    %45 = tpu.memref_slice %arg3[%44, %c0_i32_21] : memref<64x32xf32, #tpu.memory_space<any>> -> memref<1x32xf32, #tpu.memory_space<any>>
    %c5_i32_22 = arith.constant 5 : i32
    %c0_i32_23 = arith.constant 0 : i32
    %46 = tpu.memref_slice %arg6[%c5_i32_22, %c0_i32_23] : memref<8x32xf32, #tpu.memory_space<vmem>> -> memref<1x32xf32, #tpu.memory_space<vmem>>
    %47 = tpu.memref_slice %arg7[%c5_i32_20] : memref<8x!tpu.dma_semaphore, #tpu.memory_space<semaphore_mem>> -> memref<1x!tpu.dma_semaphore, #tpu.memory_space<semaphore_mem>>
    %48 = tpu.memref_squeeze %47 : memref<1x!tpu.dma_semaphore, #tpu.memory_space<semaphore_mem>> -> memref<!tpu.dma_semaphore, #tpu.memory_space<semaphore_mem>>
    tpu.enqueue_dma source(%45 : memref<1x32xf32, #tpu.memory_space<any>>) target(%46 : memref<1x32xf32, #tpu.memory_space<vmem>>) target_semaphore(%48 : memref<!tpu.dma_semaphore, #tpu.memory_space<semaphore_mem>>)
    %c6_i32 = arith.constant 6 : i32
    %49 = arith.addi %0, %c6_i32 : i32
    %50 = arith.index_cast %arg0 : i32 to index
    %51 = arith.index_cast %49 : i32 to index
    %52 = memref.load %arg2[%50, %51] : memref<2x8xi32, #tpu.memory_space<smem>>
    %c6_i32_24 = arith.constant 6 : i32
    %c0_i32_25 = arith.constant 0 : i32
    %53 = tpu.memref_slice %arg3[%52, %c0_i32_25] : memref<64x32xf32, #tpu.memory_space<any>> -> memref<1x32xf32, #tpu.memory_space<any>>
    %c6_i32_26 = arith.constant 6 : i32
    %c0_i32_27 = arith.constant 0 : i32
    %54 = tpu.memref_slice %arg6[%c6_i32_26, %c0_i32_27] : memref<8x32xf32, #tpu.memory_space<vmem>> -> memref<1x32xf32, #tpu.memory_space<vmem>>
    %55 = tpu.memref_slice %arg7[%c6_i32_24] : memref<8x!tpu.dma_semaphore, #tpu.memory_space<semaphore_mem>> -> memref<1x!tpu.dma_semaphore, #tpu.memory_space<semaphore_mem>>
    %56 = tpu.memref_squeeze %55 : memref<1x!tpu.dma_semaphore, #tpu.memory_space<semaphore_mem>> -> memref<!tpu.dma_semaphore, #tpu.memory_space<semaphore_mem>>
    tpu.enqueue_dma source(%53 : memref<1x32xf32, #tpu.memory_space<any>>) target(%54 : memref<1x32xf32, #tpu.memory_space<vmem>>) target_semaphore(%56 : memref<!tpu.dma_semaphore, #tpu.memory_space<semaphore_mem>>)
    %c7_i32 = arith.constant 7 : i32
    %57 = arith.addi %0, %c7_i32 : i32
    %58 = arith.index_cast %arg0 : i32 to index
    %59 = arith.index_cast %57 : i32 to index
    %60 = memref.load %arg2[%58, %59] : memref<2x8xi32, #tpu.memory_space<smem>>
    %c7_i32_28 = arith.constant 7 : i32
    %c0_i32_29 = arith.constant 0 : i32
    %61 = tpu.memref_slice %arg3[%60, %c0_i32_29] : memref<64x32xf32, #tpu.memory_space<any>> -> memref<1x32xf32, #tpu.memory_space<any>>
    %c7_i32_30 = arith.constant 7 : i32
    %c0_i32_31 = arith.constant 0 : i32
    %62 = tpu.memref_slice %arg6[%c7_i32_30, %c0_i32_31] : memref<8x32xf32, #tpu.memory_space<vmem>> -> memref<1x32xf32, #tpu.memory_space<vmem>>
    %63 = tpu.memref_slice %arg7[%c7_i32_28] : memref<8x!tpu.dma_semaphore, #tpu.memory_space<semaphore_mem>> -> memref<1x!tpu.dma_semaphore, #tpu.memory_space<semaphore_mem>>
    %64 = tpu.memref_squeeze %63 : memref<1x!tpu.dma_semaphore, #tpu.memory_space<semaphore_mem>> -> memref<!tpu.dma_semaphore, #tpu.memory_space<semaphore_mem>>
    tpu.enqueue_dma source(%61 : memref<1x32xf32, #tpu.memory_space<any>>) target(%62 : memref<1x32xf32, #tpu.memory_space<vmem>>) target_semaphore(%64 : memref<!tpu.dma_semaphore, #tpu.memory_space<semaphore_mem>>)
    %c0_i32_32 = arith.constant 0 : i32
    %c0_i32_33 = arith.constant 0 : i32
    %c0_i32_34 = arith.constant 0 : i32
    %65 = tpu.memref_slice %arg3[%c0_i32_33, %c0_i32_34] : memref<64x32xf32, #tpu.memory_space<any>> -> memref<1x32xf32, #tpu.memory_space<any>>
    %c0_i32_35 = arith.constant 0 : i32
    %c0_i32_36 = arith.constant 0 : i32
    %66 = tpu.memref_slice %arg6[%c0_i32_35, %c0_i32_36] : memref<8x32xf32, #tpu.memory_space<vmem>> -> memref<1x32xf32, #tpu.memory_space<vmem>>
    %67 = tpu.memref_slice %arg7[%c0_i32_32] : memref<8x!tpu.dma_semaphore, #tpu.memory_space<semaphore_mem>> -> memref<1x!tpu.dma_semaphore, #tpu.memory_space<semaphore_mem>>
    %68 = tpu.memref_squeeze %67 : memref<1x!tpu.dma_semaphore, #tpu.memory_space<semaphore_mem>> -> memref<!tpu.dma_semaphore, #tpu.memory_space<semaphore_mem>>
    tpu.wait_dma2 semaphore(%68 : memref<!tpu.dma_semaphore, #tpu.memory_space<semaphore_mem>>) src(%65 : memref<1x32xf32, #tpu.memory_space<any>>) dst(%66 : memref<1x32xf32, #tpu.memory_space<vmem>>)
    %c1_i32_37 = arith.constant 1 : i32
    %c0_i32_38 = arith.constant 0 : i32
    %c0_i32_39 = arith.constant 0 : i32
    %69 = tpu.memref_slice %arg3[%c0_i32_38, %c0_i32_39] : memref<64x32xf32, #tpu.memory_space<any>> -> memref<1x32xf32, #tpu.memory_space<any>>
    %c1_i32_40 = arith.constant 1 : i32
    %c0_i32_41 = arith.constant 0 : i32
    %70 = tpu.memref_slice %arg6[%c1_i32_40, %c0_i32_41] : memref<8x32xf32, #tpu.memory_space<vmem>> -> memref<1x32xf32, #tpu.memory_space<vmem>>
    %71 = tpu.memref_slice %arg7[%c1_i32_37] : memref<8x!tpu.dma_semaphore, #tpu.memory_space<semaphore_mem>> -> memref<1x!tpu.dma_semaphore, #tpu.memory_space<semaphore_mem>>
    %72 = tpu.memref_squeeze %71 : memref<1x!tpu.dma_semaphore, #tpu.memory_space<semaphore_mem>> -> memref<!tpu.dma_semaphore, #tpu.memory_space<semaphore_mem>>
    tpu.wait_dma2 semaphore(%72 : memref<!tpu.dma_semaphore, #tpu.memory_space<semaphore_mem>>) src(%69 : memref<1x32xf32, #tpu.memory_space<any>>) dst(%70 : memref<1x32xf32, #tpu.memory_space<vmem>>)
    %c2_i32_42 = arith.constant 2 : i32
    %c0_i32_43 = arith.constant 0 : i32
    %c0_i32_44 = arith.constant 0 : i32
    %73 = tpu.memref_slice %arg3[%c0_i32_43, %c0_i32_44] : memref<64x32xf32, #tpu.memory_space<any>> -> memref<1x32xf32, #tpu.memory_space<any>>
    %c2_i32_45 = arith.constant 2 : i32
    %c0_i32_46 = arith.constant 0 : i32
    %74 = tpu.memref_slice %arg6[%c2_i32_45, %c0_i32_46] : memref<8x32xf32, #tpu.memory_space<vmem>> -> memref<1x32xf32, #tpu.memory_space<vmem>>
    %75 = tpu.memref_slice %arg7[%c2_i32_42] : memref<8x!tpu.dma_semaphore, #tpu.memory_space<semaphore_mem>> -> memref<1x!tpu.dma_semaphore, #tpu.memory_space<semaphore_mem>>
    %76 = tpu.memref_squeeze %75 : memref<1x!tpu.dma_semaphore, #tpu.memory_space<semaphore_mem>> -> memref<!tpu.dma_semaphore, #tpu.memory_space<semaphore_mem>>
    tpu.wait_dma2 semaphore(%76 : memref<!tpu.dma_semaphore, #tpu.memory_space<semaphore_mem>>) src(%73 : memref<1x32xf32, #tpu.memory_space<any>>) dst(%74 : memref<1x32xf32, #tpu.memory_space<vmem>>)
    %c3_i32_47 = arith.constant 3 : i32
    %c0_i32_48 = arith.constant 0 : i32
    %c0_i32_49 = arith.constant 0 : i32
    %77 = tpu.memref_slice %arg3[%c0_i32_48, %c0_i32_49] : memref<64x32xf32, #tpu.memory_space<any>> -> memref<1x32xf32, #tpu.memory_space<any>>
    %c3_i32_50 = arith.constant 3 : i32
    %c0_i32_51 = arith.constant 0 : i32
    %78 = tpu.memref_slice %arg6[%c3_i32_50, %c0_i32_51] : memref<8x32xf32, #tpu.memory_space<vmem>> -> memref<1x32xf32, #tpu.memory_space<vmem>>
    %79 = tpu.memref_slice %arg7[%c3_i32_47] : memref<8x!tpu.dma_semaphore, #tpu.memory_space<semaphore_mem>> -> memref<1x!tpu.dma_semaphore, #tpu.memory_space<semaphore_mem>>
    %80 = tpu.memref_squeeze %79 : memref<1x!tpu.dma_semaphore, #tpu.memory_space<semaphore_mem>> -> memref<!tpu.dma_semaphore, #tpu.memory_space<semaphore_mem>>
    tpu.wait_dma2 semaphore(%80 : memref<!tpu.dma_semaphore, #tpu.memory_space<semaphore_mem>>) src(%77 : memref<1x32xf32, #tpu.memory_space<any>>) dst(%78 : memref<1x32xf32, #tpu.memory_space<vmem>>)
    %c4_i32_52 = arith.constant 4 : i32
    %c0_i32_53 = arith.constant 0 : i32
    %c0_i32_54 = arith.constant 0 : i32
    %81 = tpu.memref_slice %arg3[%c0_i32_53, %c0_i32_54] : memref<64x32xf32, #tpu.memory_space<any>> -> memref<1x32xf32, #tpu.memory_space<any>>
    %c4_i32_55 = arith.constant 4 : i32
    %c0_i32_56 = arith.constant 0 : i32
    %82 = tpu.memref_slice %arg6[%c4_i32_55, %c0_i32_56] : memref<8x32xf32, #tpu.memory_space<vmem>> -> memref<1x32xf32, #tpu.memory_space<vmem>>
    %83 = tpu.memref_slice %arg7[%c4_i32_52] : memref<8x!tpu.dma_semaphore, #tpu.memory_space<semaphore_mem>> -> memref<1x!tpu.dma_semaphore, #tpu.memory_space<semaphore_mem>>
    %84 = tpu.memref_squeeze %83 : memref<1x!tpu.dma_semaphore, #tpu.memory_space<semaphore_mem>> -> memref<!tpu.dma_semaphore, #tpu.memory_space<semaphore_mem>>
    tpu.wait_dma2 semaphore(%84 : memref<!tpu.dma_semaphore, #tpu.memory_space<semaphore_mem>>) src(%81 : memref<1x32xf32, #tpu.memory_space<any>>) dst(%82 : memref<1x32xf32, #tpu.memory_space<vmem>>)
    %c5_i32_57 = arith.constant 5 : i32
    %c0_i32_58 = arith.constant 0 : i32
    %c0_i32_59 = arith.constant 0 : i32
    %85 = tpu.memref_slice %arg3[%c0_i32_58, %c0_i32_59] : memref<64x32xf32, #tpu.memory_space<any>> -> memref<1x32xf32, #tpu.memory_space<any>>
    %c5_i32_60 = arith.constant 5 : i32
    %c0_i32_61 = arith.constant 0 : i32
    %86 = tpu.memref_slice %arg6[%c5_i32_60, %c0_i32_61] : memref<8x32xf32, #tpu.memory_space<vmem>> -> memref<1x32xf32, #tpu.memory_space<vmem>>
    %87 = tpu.memref_slice %arg7[%c5_i32_57] : memref<8x!tpu.dma_semaphore, #tpu.memory_space<semaphore_mem>> -> memref<1x!tpu.dma_semaphore, #tpu.memory_space<semaphore_mem>>
    %88 = tpu.memref_squeeze %87 : memref<1x!tpu.dma_semaphore, #tpu.memory_space<semaphore_mem>> -> memref<!tpu.dma_semaphore, #tpu.memory_space<semaphore_mem>>
    tpu.wait_dma2 semaphore(%88 : memref<!tpu.dma_semaphore, #tpu.memory_space<semaphore_mem>>) src(%85 : memref<1x32xf32, #tpu.memory_space<any>>) dst(%86 : memref<1x32xf32, #tpu.memory_space<vmem>>)
    %c6_i32_62 = arith.constant 6 : i32
    %c0_i32_63 = arith.constant 0 : i32
    %c0_i32_64 = arith.constant 0 : i32
    %89 = tpu.memref_slice %arg3[%c0_i32_63, %c0_i32_64] : memref<64x32xf32, #tpu.memory_space<any>> -> memref<1x32xf32, #tpu.memory_space<any>>
    %c6_i32_65 = arith.constant 6 : i32
    %c0_i32_66 = arith.constant 0 : i32
    %90 = tpu.memref_slice %arg6[%c6_i32_65, %c0_i32_66] : memref<8x32xf32, #tpu.memory_space<vmem>> -> memref<1x32xf32, #tpu.memory_space<vmem>>
    %91 = tpu.memref_slice %arg7[%c6_i32_62] : memref<8x!tpu.dma_semaphore, #tpu.memory_space<semaphore_mem>> -> memref<1x!tpu.dma_semaphore, #tpu.memory_space<semaphore_mem>>
    %92 = tpu.memref_squeeze %91 : memref<1x!tpu.dma_semaphore, #tpu.memory_space<semaphore_mem>> -> memref<!tpu.dma_semaphore, #tpu.memory_space<semaphore_mem>>
    tpu.wait_dma2 semaphore(%92 : memref<!tpu.dma_semaphore, #tpu.memory_space<semaphore_mem>>) src(%89 : memref<1x32xf32, #tpu.memory_space<any>>) dst(%90 : memref<1x32xf32, #tpu.memory_space<vmem>>)
    %c7_i32_67 = arith.constant 7 : i32
    %c0_i32_68 = arith.constant 0 : i32
    %c0_i32_69 = arith.constant 0 : i32
    %93 = tpu.memref_slice %arg3[%c0_i32_68, %c0_i32_69] : memref<64x32xf32, #tpu.memory_space<any>> -> memref<1x32xf32, #tpu.memory_space<any>>
    %c7_i32_70 = arith.constant 7 : i32
    %c0_i32_71 = arith.constant 0 : i32
    %94 = tpu.memref_slice %arg6[%c7_i32_70, %c0_i32_71] : memref<8x32xf32, #tpu.memory_space<vmem>> -> memref<1x32xf32, #tpu.memory_space<vmem>>
    %95 = tpu.memref_slice %arg7[%c7_i32_67] : memref<8x!tpu.dma_semaphore, #tpu.memory_space<semaphore_mem>> -> memref<1x!tpu.dma_semaphore, #tpu.memory_space<semaphore_mem>>
    %96 = tpu.memref_squeeze %95 : memref<1x!tpu.dma_semaphore, #tpu.memory_space<semaphore_mem>> -> memref<!tpu.dma_semaphore, #tpu.memory_space<semaphore_mem>>
    tpu.wait_dma2 semaphore(%96 : memref<!tpu.dma_semaphore, #tpu.memory_space<semaphore_mem>>) src(%93 : memref<1x32xf32, #tpu.memory_space<any>>) dst(%94 : memref<1x32xf32, #tpu.memory_space<vmem>>)
    %c0 = arith.constant 0 : index
    %c0_72 = arith.constant 0 : index
    %97 = vector.load %arg6[%c0, %c0_72] : memref<8x32xf32, #tpu.memory_space<vmem>>, vector<8x32xf32>
    %c0_73 = arith.constant 0 : index
    %c0_74 = arith.constant 0 : index
    %98 = vector.load %arg4[%c0_73, %c0_74] : memref<8x32xf32, #tpu.memory_space<vmem>>, vector<8x32xf32>
    %99 = arith.addf %97, %98 : vector<8x32xf32>
    %c0_75 = arith.constant 0 : index
    %c0_76 = arith.constant 0 : index
    %c0_77 = arith.constant 0 : index
    %100 = vector.load %arg5[%c0_75, %c0_76, %c0_77] : memref<1x8x32xf32, #tpu.memory_space<vmem>>, vector<1x8x32xf32>
    %101 = vector.shape_cast %100 : vector<1x8x32xf32> to vector<8x32xf32>
    %102 = vector.shape_cast %99 : vector<8x32xf32> to vector<1x8x32xf32>
    tpu.vector_store %arg5[%c0_75, %c0_76, %c0_77], %102 {strides = array<i32>} : memref<1x8x32xf32, #tpu.memory_space<vmem>>, vector<1x8x32xf32>,
    return
  }
  func.func @transform_1(%arg0: i32, %arg1: i32, %arg2: memref<2x8xi32, #tpu.memory_space<smem>>) -> (i32, i32) {
    %c0_i32 = arith.constant 0 : i32
    %c0_i32_0 = arith.constant 0 : i32
    return %arg1, %c0_i32 : i32, i32
  }
  func.func @transform_2(%arg0: i32, %arg1: i32, %arg2: memref<2x8xi32, #tpu.memory_space<smem>>) -> (i32, i32, i32) {
    %c0_i32 = arith.constant 0 : i32
    %c0_i32_0 = arith.constant 0 : i32
    return %arg0, %arg1, %c0_i32 : i32, i32, i32
  }
}

</mosaic_0001>

<bundles_post_ra>
// kernel: tpu_custom_call.1
= control target key start
LH: loop header
LB: loop body
LE: loop exit
PB: predicated region body
PF: predicated region fallthrough
CT: control target
= control target key end

     0   :  { %s899_s15 = smov [#allocation5]   ;;  %s1064_s0 = inlined_call_operand.vmem [shape: s32[2,8], index: 0, kind: input, shape index: {}]   ;;  %s1065_s1 = inlined_call_operand.vmem [shape: f32[64,32], index: 1, kind: input, shape index: {}]   ;;  %s1066_s2 = inlined_call_operand.vmem [shape: f32[8,32], index: 2, kind: input, shape index: {}]   ;;  %s1067_s3 = inlined_call_operand.hbm [shape: f32[2,8,32], index: 3, kind: output, shape index: {}]  }
   0x1   :  { %s9_s14 = sshll.u32 %s1064_s0, 4  ;;  %s10_s14 = int_to_ptr.vmem [resolvable:$true] %s9_s14 }
   0x2   :  { %12 = dma.vmem_to_smem %s10_s14, 32, %s899_s15, [#allocation4] }
   0x3   :  { %853 = dma.done.wait [#allocation4], 32 }
   0x4   :  { %854 = vsyncadd [#allocation4], 4294967264 }
   0x5   :  { %15 = sfence }
   0x6   :  { %16 = vsyncpa [#allocation7], 0 }
   0x7   :  { %18 = vsyncpa [#allocation7 + $0x1], 0  ;;  %s923_s16 = smov 0   ;;  %s925_s17 = smov 0  }
   0x8   :  { %s927_s18 = smov 0   ;;  %s929_s19 = smov 0  }
   0x9   :  { %s931_s20 = smov 0   ;;  %s933_s21 = smov 0  }
   0xa LB: > { %s707_s0 = sadd.s32 4294967295, %s897_s21   ;;  %s708_s22 = sadd.s32 4294967294, %s897_s21   ;;  %s897_s21 = sphi %s933_s21, %s24_s21   ;;  %s893_s20 = sphi %s931_s20, %s1074_s20   ;;  %s889_s19 = sphi %s929_s19, %s1073_s19   ;;  %s885_s18 = sphi %s927_s18, %s1072_s18   ;;  %s881_s17 = sphi %s925_s17, %s1071_s17   ;;  %s877_s16 = sphi %s923_s16, %s1070_s16  }
   0xb   : > { %s36_s23 = sadd.s32 1, %s893_s20  ;;  %s71_s24 = sadd.s32 1, %s885_s18 }
   0xc   : > { %p38_p0 = scmp.ge.s32.totalorder %s36_s23, 2  ;;  %p81_p1 = scmp.ne.s32.totalorder %s885_s18, %s881_s17 }
   0xd   : > { %p82_p2 = scmp.eq.s32.totalorder %s707_s0, 1  ;;  %p87_p3 = scmp.ne.s32.totalorder %s881_s17, %s877_s16 }
   0xe   : > { %s1076_s23 = smov (%p38_p0, %s36_s23), 0  ;;  %p88_p5 = scmp.eq.s32.totalorder %s708_s22, 1 }
   0xf   : > { %p963_p4 = por %p82_p2, %p81_p1  ;;  %s66_s26 = ssub.s32 %s893_s20, %s1076_s23 }
  0x10   : > { %p711_p6 = scmp.ge.s32.totalorder %s897_s21, 1  ;;  %p69_p7 = scmp.eq.s32.totalorder %s66_s26, 0 }
  0x11   : > { %p970_p8 = por %p88_p5, %p87_p3  ;;  %p113_p9 = scmp.lt.s32.totalorder %s897_s21, 3 }
  0x12   : > { %s976_s28 = scalar_select %p69_p7, %s885_s18, %s71_s24  }
  0x13   : > { %p114_p10 = pnand %p711_p6, %p113_p9 }
  0x14   : > { %s129_s29 = sand.u32 (!%p114_p10), 1, %s881_s17   ;;  %s980_s30 = sshll.u32 (!%p114_p10), %s889_s19, 7 }
  0x15   : > { %117 = sbr.rel (%p114_p10) target bundleno = 132 (0x84), region = 24  ;;  %s984_s4 = sshll.u32 (!%p114_p10), %s129_s29, 3 }
  0x16   : > { %s144_s5 = sld [smem:[#allocation5 + %s980_s30]] (!%p114_p10)  ;;  %s131_s9 = scalar_lea.vmem (!%p114_p10), [#allocation6], %s984_s4 }
  0x1c   : > { %s145_s8 = scalar_lea.vmem %s1065_s1, %s144_s5 }
  0x1d   : > { %v160_v0 = vld [vmem:[%s145_s8] sm:$0x1] }
  0x1e   : > { %161 = vst [vmem:[#allocation2] sm:$0x1] %v160_v0 }
  0x1f   : > { %179 = vsyncadd [#allocation3], 16  ;;  %s187_s10 = sadd.s32 1, %s980_s30 }
  0x20   : > { %s188_s11 = sld [smem:[#allocation5 + %s187_s10]] }
  0x26   : > { %s189_s14 = scalar_lea.vmem %s1065_s1, %s188_s11 }
  0x27   : > { %v206_v1 = vld [vmem:[%s189_s14] sm:$0x1] }
  0x28   : > { %207 = vst [vmem:[#allocation2 + $0x1] sm:$0x1] %v206_v1 }
  0x29   : > { %225 = vsyncadd [#allocation3 + $0x1], 16  ;;  %s233_s15 = sadd.s32 2, %s980_s30 }
  0x2a   : > { %s234_s0 = sld [smem:[#allocation5 + %s233_s15]] }
  0x30   : > { %s235_s26 = scalar_lea.vmem %s1065_s1, %s234_s0 }
  0x31   : > { %v252_v2 = vld [vmem:[%s235_s26] sm:$0x1] }
  0x32   : > { %253 = vst [vmem:[#allocation2 + $0x2] sm:$0x1] %v252_v2 }
  0x33   : > { %271 = vsyncadd [#allocation3 + $0x2], 16  ;;  %s279_s5 = sadd.s32 3, %s980_s30 }
  0x34   : > { %s280_s6 = sld [smem:[#allocation5 + %s279_s5]] }
  0x3a   : > { %s281_s10 = scalar_lea.vmem %s1065_s1, %s280_s6 }
  0x3b   : > { %v298_v3 = vld [vmem:[%s281_s10] sm:$0x1] }
  0x3c   : > { %299 = vst [vmem:[#allocation2 + $0x3] sm:$0x1] %v298_v3 }
  0x3d   : > { %317 = vsyncadd [#allocation3 + $0x3], 16  ;;  %s325_s11 = sadd.s32 4, %s980_s30 }
  0x3e   : > { %s326_s12 = sld [smem:[#allocation5 + %s325_s11]] }
  0x44   : > { %s327_s15 = scalar_lea.vmem %s1065_s1, %s326_s12 }
  0x45   : > { %v344_v4 = vld [vmem:[%s327_s15] sm:$0x1] }
  0x46   : > { %345 = vst [vmem:[#allocation2 + $0x4] sm:$0x1] %v344_v4 }
  0x47   : > { %363 = vsyncadd [#allocation3 + $0x4], 16  ;;  %s371_s0 = sadd.s32 5, %s980_s30 }
  0x48   : > { %s372_s22 = sld [smem:[#allocation5 + %s371_s0]] }
  0x4e   : > { %s373_s5 = scalar_lea.vmem %s1065_s1, %s372_s22 }
  0x4f   : > { %v390_v5 = vld [vmem:[%s373_s5] sm:$0x1] }
  0x50   : > { %391 = vst [vmem:[#allocation2 + $0x5] sm:$0x1] %v390_v5 }
  0x51   : > { %409 = vsyncadd [#allocation3 + $0x5], 16  ;;  %s417_s6 = sadd.s32 6, %s980_s30 }
  0x52   : > { %s418_s7 = sld [smem:[#allocation5 + %s417_s6]] }
  0x58   : > { %s419_s11 = scalar_lea.vmem %s1065_s1, %s418_s7 }
  0x59   : > { %v436_v6 = vld [vmem:[%s419_s11] sm:$0x1] }
  0x5a   : > { %437 = vst [vmem:[#allocation2 + $0x6] sm:$0x1] %v436_v6 }
  0x5b   : > { %455 = vsyncadd [#allocation3 + $0x6], 16  ;;  %s463_s12 = sadd.s32 7, %s980_s30 }
  0x5c   : > { %s464_s13 = sld [smem:[#allocation5 + %s463_s12]] }
  0x62   : > { %s465_s0 = scalar_lea.vmem %s1065_s1, %s464_s13 }
  0x63   : > { %v482_v7 = vld [vmem:[%s465_s0] sm:$0x1] }
  0x64   : > { %483 = vst [vmem:[#allocation2 + $0x7] sm:$0x1] %v482_v7 }
  0x65   : > { %501 = vsyncadd [#allocation3 + $0x7], 16 }
  0x66   : > { %855 = dma.done.wait [#allocation3], 16 }
  0x67   : > { %856 = vsyncadd [#allocation3], 4294967280 }
  0x68   : > { %857 = dma.done.wait [#allocation3 + $0x1], 16 }
  0x69   : > { %858 = vsyncadd [#allocation3 + $0x1], 4294967280 }
  0x6a   : > { %859 = dma.done.wait [#allocation3 + $0x2], 16 }
  0x6b   : > { %860 = vsyncadd [#allocation3 + $0x2], 4294967280 }
  0x6c   : > { %861 = dma.done.wait [#allocation3 + $0x3], 16 }
  0x6d   : > { %862 = vsyncadd [#allocation3 + $0x3], 4294967280 }
  0x6e   : > { %863 = dma.done.wait [#allocation3 + $0x4], 16 }
  0x6f   : > { %864 = vsyncadd [#allocation3 + $0x4], 4294967280 }
  0x70   : > { %865 = dma.done.wait [#allocation3 + $0x5], 16 }
  0x71   : > { %866 = vsyncadd [#allocation3 + $0x5], 4294967280 }
  0x72   : > { %867 = dma.done.wait [#allocation3 + $0x6], 16 }
  0x73   : > { %868 = vsyncadd [#allocation3 + $0x6], 4294967280 }
  0x74   : > { %869 = dma.done.wait [#allocation3 + $0x7], 16 }
  0x75   : > { %870 = vsyncadd [#allocation3 + $0x7], 4294967280  ;;  %s722_s30 = sshll.u32 %s889_s19, 3  ;;  %s538_s5 = sshll.u32 %s131_s9, 4  ;;  %v519_v8 = vld [vmem:[#allocation2] sm:$0xff]  ;;  %vm522_vm0 = vcmask 261120   ;;  %s539_s5 = int_to_ptr.vmem [resolvable:$true] %s538_s5 }
  0x76   : > { %s536_s26 = scalar_lea.hbm %s1067_s3, %s722_s30  ;;  %v520_v9 = vld [vmem:[%s1066_s2] sm:$0xff]  ;;  %s525_s19 = scalar_lea.sflag [#allocation7], %s129_s29 }
  0x77   : > { %s540_s6 = sshll.u32 %s536_s26, 4  ;;  %v521_v10 = vadd.f32 %v520_v9, %v519_v8  ;;  %s821_s14 = scalar_lea.hbm %s1067_s3, 16  ;;  %s541_s6 = int_to_ptr.hbm [resolvable:$true] %s540_s6 }
  0x78   : > { %s815_s10 = sshra.s32 %s541_s6, 4  ;;  %s816_s10 = int_to_ptr.hbm [resolvable:$true] %s815_s10 }
  0x79   : > { %523 = vst.msk [vmem:[%s131_s9] sm:$0xff] %vm522_vm0, %v521_v10  ;;  %s817_s11 = scalar_lea.hbm %s816_s10, 8  ;;  %p822_p0 = scmp.lt.s32.totalorder %s816_s10, %s1067_s3 }
  0x7a   : > { %p818_p11 = scmp.ne.s32.totalorder %s816_s10, %s817_s11  ;;  %p823_p1 = scmp.lt.s32.totalorder %s821_s14, %s817_s11 }
  0x7c   : > { %p819_p12 = pnand %p818_p11, %p963_p4  ;;  %p824_p2 = por %p823_p1, %p822_p0 }
  0x7e   : > { %p820_p13 = pneg %p819_p12 }
  0x80   : > { %p825_p3 = pnand %p824_p2, %p820_p13 }
  0x82   : > { %828 = shalt.err (!%p825_p3)
}
  0x83   : > { %733 = dma.vmem_to_hbm [thread:$0]  (%p963_p4), %s539_s5, 128, %s541_s6, %s525_s19  }
  0x84 PF: > { %p739_p5 = scmp.ge.s32.totalorder %s897_s21, 2  ;;  %s552_s29 = sand.u32 1, %s877_s16  }
  0x85   : > { %s553_s4 = scalar_lea.sflag [#allocation7], %s552_s29 }
  0x86   : > { %p736_p6 = pnand %p739_p5, %p970_p8 }
  0x88   : > { %p737_p7 = pneg %p736_p6 }
  0x8a   : > { %872 = dma.done.wait (%p737_p7), %s553_s4, 128  }
  0x8b   : > { %874 = vsyncadd (%p737_p7), %s553_s4, 4294967168  ;;  %s24_s21 = sadd.s32 1, %s897_s21   ;;  %s1070_s16 = smov %s881_s17 }
  0x8c   : > { %p21_p9 = scmp.ge.s32.totalorder %s24_s21, 4   ;;  %s1071_s17 = smov %s885_s18 }
  0x8d   : > { %s1072_s18 = smov %s976_s28  ;;  %s1073_s19 = smov %s893_s20 }
  0x8e   : > { %s1074_s20 = smov %s1076_s23  ;;  %23 = sbr.rel (!%p21_p9) target bundleno = 10 (0xa), region = 360 }
  0x93   :  { %559 = vsyncpa [#allocation7], 1 }
  0x94   :  { %561 = vsyncpa [#allocation7 + $0x1], 1 }
  0x95   :  { %562 = vsyncmov [#allocation3] }
  0x98   :  { %s563_s25 = vpop.sfrf %562 }
  0x99   :  { %p725_p4 = scmp.ne.s32.totalorder %s563_s25, 0 }
  0x9b   :  { %567 = shalt.err (%p725_p4)  }
  0x9c   :  { %569 = vsyncmov [#allocation3 + $0x1] }
  0x9f   :  { %s570_s27 = vpop.sfrf %569 }
  0xa0   :  { %p726_p8 = scmp.ne.s32.totalorder %s570_s27, 0 }
  0xa2   :  { %574 = shalt.err (%p726_p8)  }
  0xa3   :  { %576 = vsyncmov [#allocation3 + $0x2] }
  0xa6   :  { %s577_s9 = vpop.sfrf %576 }
  0xa7   :  { %p727_p10 = scmp.ne.s32.totalorder %s577_s9, 0 }
  0xa9   :  { %581 = shalt.err (%p727_p10)  }
  0xaa   :  { %583 = vsyncmov [#allocation3 + $0x3] }
  0xad   :  { %s584_s28 = vpop.sfrf %583 }
  0xae   :  { %p728_p11 = scmp.ne.s32.totalorder %s584_s28, 0 }
  0xb0   :  { %588 = shalt.err (%p728_p11)  }
  0xb1   :  { %590 = vsyncmov [#allocation3 + $0x4] }
  0xb4   :  { %s591_s21 = vpop.sfrf %590 }
  0xb5   :  { %p729_p12 = scmp.ne.s32.totalorder %s591_s21, 0 }
  0xb7   :  { %595 = shalt.err (%p729_p12)  }
  0xb8   :  { %597 = vsyncmov [#allocation3 + $0x5] }
  0xbb   :  { %s598_s1 = vpop.sfrf %597 }
  0xbc   :  { %p730_p13 = scmp.ne.s32.totalorder %s598_s1, 0 }
  0xbe   :  { %602 = shalt.err (%p730_p13)  }
  0xbf   :  { %604 = vsyncmov [#allocation3 + $0x6] }
  0xc2   :  { %s605_s2 = vpop.sfrf %604 }
  0xc3   :  { %p731_p0 = scmp.ne.s32.totalorder %s605_s2, 0 }
  0xc5   :  { %609 = shalt.err (%p731_p0)  }
  0xc6   :  { %611 = vsyncmov [#allocation3 + $0x7] }
  0xc9   :  { %s612_s3 = vpop.sfrf %611 }
  0xca   :  { %p732_p1 = scmp.ne.s32.totalorder %s612_s3, 0 }
  0xcc   :  { %616 = shalt.err (%p732_p1)  }

</bundles_post_ra>
